<compile_context>
chip_gen: v7x
topology: tpu7x:2x2x1
jax: 0.10.0
libtpu: 0.0.40
codegen_flags: <defaults>
</compile_context>

<pallas_src>
import functools

import jax
import jax.numpy as jnp
from jax.experimental import pallas as pl
from jax.experimental.pallas import tpu as pltpu


def _round_up(x, m):
    return ((x + m - 1) // m) * m


# ---------------------------------------------------------------------------
# Path 1: fully-fused whole-network kernel (all layers in one pallas_call)
# ---------------------------------------------------------------------------
def _fused_mlp_kernel(x_ref, w_ref, shift_ref, o_ref, h_ref):
    """Grid axis 0 = layer index. Activation stays resident in VMEM scratch."""
    n_layers = pl.num_programs(0)
    l = pl.program_id(0)

    @pl.when(l == 0)
    def _():
        h_ref[...] = x_ref[...].astype(jnp.float32)

    # Matmul in the weight dtype (bf16 or f32), accumulate in f32 on the MXU.
    y = jnp.dot(h_ref[...].astype(w_ref.dtype), w_ref[0],
                preferred_element_type=jnp.float32) + shift_ref[0]

    @pl.when(l < n_layers - 1)
    def _():
        h_ref[...] = jnp.maximum(y, 0.0)        # hidden layers: ReLU

    @pl.when(l == n_layers - 1)
    def _():
        o_ref[...] = y.astype(o_ref.dtype)      # final Linear: no ReLU


def _fused_mlp_call(x_pad, w_stacked, shift_stacked):
    L, P, _ = w_stacked.shape
    Mp = x_pad.shape[0]
    return pl.pallas_call(
        _fused_mlp_kernel,
        out_shape=jax.ShapeDtypeStruct((Mp, P), jnp.float32),
        grid_spec=pltpu.PrefetchScalarGridSpec(
            num_scalar_prefetch=0,
            grid=(L,),
            in_specs=[
                pl.BlockSpec((Mp, P), lambda l: (0, 0)),        # x (layer 0 only)
                pl.BlockSpec((1, P, P), lambda l: (l, 0, 0)),   # weights, streamed
                pl.BlockSpec((1, 1, P), lambda l: (l, 0, 0)),   # shift, streamed
            ],
            out_specs=pl.BlockSpec((Mp, P), lambda l: (0, 0)),  # lane-dense slab
            scratch_shapes=[pltpu.VMEM((Mp, P), jnp.float32)],  # resident activation
        ),
        compiler_params=pltpu.CompilerParams(
            dimension_semantics=("arbitrary",)),  # layers are sequentially dependent
    )(x_pad, w_stacked, shift_stacked)


def prepare_fused_params(params, input_size):
    """Pad every layer to a uniform lane-dense (P, P) slab and stack them."""
    dims = [input_size] + [p["w"].shape[1] for p in params]
    P = _round_up(max(dims), 128)
    wdtype = params[0]["w"].dtype
    ws, shifts = [], []
    for p in params:
        K, N = p["w"].shape
        w = jnp.zeros((P, P), wdtype).at[:K, :N].set(p["w"])
        s = jnp.zeros((1, P), jnp.float32).at[0, :N].set(
            p["shift"].astype(jnp.float32))
        ws.append(w)
        shifts.append(s)
    return jnp.stack(ws), jnp.stack(shifts)


@functools.partial(jax.jit, static_argnames=("output_size",))
def dense_net_forward_fused(x, w_stacked, shift_stacked, *, output_size):
    M, K = x.shape
    P = w_stacked.shape[1]
    Mp = _round_up(M, 8)
    x_pad = jnp.zeros((Mp, P), jnp.float32).at[:M, :K].set(x.astype(jnp.float32))
    out = _fused_mlp_call(x_pad, w_stacked, shift_stacked)
    return out[:M, :output_size]


# ---------------------------------------------------------------------------
# Path 2: per-layer tiled matmul (large hidden sizes)
# ---------------------------------------------------------------------------
def _linear_kernel(x_ref, w_ref, shift_ref, o_ref, acc_ref, *, apply_relu):
    k = pl.program_id(2)

    @pl.when(k == 0)
    def _():
        acc_ref[...] = jnp.zeros_like(acc_ref)

    acc_ref[...] += jnp.dot(x_ref[...].astype(w_ref.dtype), w_ref[...],
                            preferred_element_type=jnp.float32)

    @pl.when(k == pl.num_programs(2) - 1)
    def _():
        y = acc_ref[...] + shift_ref[...]
        if apply_relu:
            y = jnp.maximum(y, 0.0)
        o_ref[...] = y.astype(o_ref.dtype)


def linear_bias_act(x, w, shift, *, apply_relu, tm=128, tn=512, tk=512):
    """y = relu?((x @ w) + shift); w already has the BN scale folded in."""
    M, K = x.shape
    K2, N = w.shape
    assert K == K2

    # Tile sizes: lane/sublane friendly; >=256 multiples feed the v6e/v7x MXU fully.
    tk = min(tk, _round_up(K, 128))
    tn = min(tn, _round_up(N, 128))
    if M <= 128:
        Mp = _round_up(M, 8)
        tm = Mp
    else:
        Mp = _round_up(M, 128)
        tm = 128
    Kp = _round_up(K, tk)
    Np = _round_up(N, tn)

    x_p = x if (Mp == M and Kp == K) else (
        jnp.zeros((Mp, Kp), x.dtype).at[:M, :K].set(x))
    w_p = w if (Kp == K and Np == N) else (
        jnp.zeros((Kp, Np), w.dtype).at[:K, :N].set(w))
    s_p = jnp.zeros((1, Np), jnp.float32).at[0, :N].set(shift.astype(jnp.float32))

    n_ksteps = Kp // tk
    if n_ksteps >= 4:
        # Weight stream is the bandwidth bottleneck at small batch: 3-deep buffer.
        w_spec = pl.BlockSpec((tk, tn), lambda i, j, k: (k, j),
                              pipeline_mode=pl.Buffered(3))
    else:
        w_spec = pl.BlockSpec((tk, tn), lambda i, j, k: (k, j))

    kernel = functools.partial(_linear_kernel, apply_relu=apply_relu)
    out = pl.pallas_call(
        kernel,
        out_shape=jax.ShapeDtypeStruct((Mp, Np), jnp.float32),
        grid_spec=pltpu.PrefetchScalarGridSpec(
            num_scalar_prefetch=0,
            grid=(Mp // tm, Np // tn, Kp // tk),
            in_specs=[
                pl.BlockSpec((tm, tk), lambda i, j, k: (i, k)),
                w_spec,
                pl.BlockSpec((1, tn), lambda i, j, k: (0, j)),
            ],
            out_specs=pl.BlockSpec((tm, tn), lambda i, j, k: (i, j)),
            scratch_shapes=[pltpu.VMEM((tm, tn), jnp.float32)],
        ),
        compiler_params=pltpu.CompilerParams(
            dimension_semantics=("parallel", "parallel", "arbitrary"),
            vmem_limit_bytes=32 * 1024 * 1024),
    )(x_p, w_p, s_p)
    return out[:M, :N]


@jax.jit
def dense_net_forward_per_layer(x, params):
    h = x.astype(jnp.float32)
    n = len(params)
    for i, p in enumerate(params):
        h = linear_bias_act(h, p["w"], p["shift"], apply_relu=(i < n - 1))
    return h


# ---------------------------------------------------------------------------
# Dispatcher: fuse whole network when the padded layer slab fits VMEM budget
# ---------------------------------------------------------------------------
def dense_net_forward(x, params, *, force_per_layer=False):
    dims = [x.shape[1]] + [p["w"].shape[1] for p in params]
    P = _round_up(max(dims), 128)
    wbytes = params[0]["w"].dtype.itemsize
    # double-buffered (P,P) weight slab + activation/out slabs must fit comfortably
    # in the scoped VMEM budget (conservative for v7x's 64 MiB physical / 32 scoped).
    fused_fits = (3 * P * P * wbytes) <= (16 * 1024 * 1024)
    if fused_fits and not force_per_layer:
        w_stacked, shift_stacked = prepare_fused_params(params, x.shape[1])
        return dense_net_forward_fused(
            x, w_stacked, shift_stacked, output_size=params[-1]["w"].shape[1])
    return dense_net_forward_per_layer(x, params)


# ---------------------------------------------------------------------------
# Parameter construction (deterministic; mimics PyTorch default inits)
# ---------------------------------------------------------------------------
def init_dense_net_params(key, input_size, hidden_size, output_size,
                          n_hidden=6, weight_dtype=jnp.float32):
    """Per-layer dicts with BN scale folded into W; only additive `shift` remains."""
    params = []
    dims = [input_size] + [hidden_size] * n_hidden
    eps = 1e-5
    for li in range(n_hidden):
        fan_in, fan_out = dims[li], dims[li + 1]
        key, kw, kb, kg, kbe, km, kv = jax.random.split(key, 7)
        bound = 1.0 / jnp.sqrt(fan_in)
        w = jax.random.uniform(kw, (fan_in, fan_out), jnp.float32, -bound, bound)
        b = jax.random.uniform(kb, (fan_out,), jnp.float32, -bound, bound)
        gamma = jax.random.uniform(kg, (fan_out,), jnp.float32, 0.5, 1.5)
        beta = 0.1 * jax.random.normal(kbe, (fan_out,), jnp.float32)
        r_mean = 0.1 * jax.random.normal(km, (fan_out,), jnp.float32)
        r_var = jax.random.uniform(kv, (fan_out,), jnp.float32, 0.5, 1.5)
        # bn(x@W + b) = (x@W)*s + (b - mean)*s + beta, with s = gamma/sqrt(var+eps)
        s = gamma / jnp.sqrt(r_var + eps)
        w_folded = (w * s[None, :]).astype(weight_dtype)   # scale folded into W
        shift = (b - r_mean) * s + beta                    # stays f32
        params.append({"w": w_folded, "shift": shift})
    # Final Linear (no BN, no ReLU)
    fan_in, fan_out = hidden_size, output_size
    key, kw, kb = jax.random.split(key, 3)
    bound = 1.0 / jnp.sqrt(fan_in)
    w = jax.random.uniform(kw, (fan_in, fan_out), jnp.float32, -bound, bound)
    b = jax.random.uniform(kb, (fan_out,), jnp.float32, -bound, bound)
    params.append({"w": w.astype(weight_dtype), "shift": b})
    return params


def dense_net_reference(x, params):
    """Pure-JAX reference mirroring the kernel's dtype handling (f32 accumulate)."""
    h = x.astype(jnp.float32)
    n = len(params)
    for i, p in enumerate(params):
        hc = h.astype(p["w"].dtype).astype(jnp.float32)
        y = hc @ p["w"].astype(jnp.float32) + p["shift"].astype(jnp.float32)
        h = jnp.maximum(y, 0.0) if i < n - 1 else y
    return h


if __name__ == "__main__":
    # Dropout(p=0.35) is identity at inference and therefore omitted.
    key = jax.random.PRNGKey(0)

    # --- Test 1: small config -> fully fused single-kernel path (f32 weights) ---
    batch, input_size, hidden_size, output_size = 8, 32, 128, 16
    key, kx, kp = jax.random.split(key, 3)
    x = jax.random.normal(kx, (batch, input_size), jnp.float32)
    params = init_dense_net_params(kp, input_size, hidden_size, output_size)

    out = jax.block_until_ready(dense_net_forward(x, params))
    ref = dense_net_reference(x, params)
    assert out.shape == (batch, output_size)
    assert jnp.allclose(out, ref, atol=1e-3, rtol=1e-3), "fused path mismatch"

    # --- Test 2: larger hidden -> per-layer tiled path with bf16 weights ---
    hidden2 = 2048
    key, kx2, kp2 = jax.random.split(key, 3)
    x2 = jax.random.normal(kx2, (batch, input_size), jnp.float32)
    params2 = init_dense_net_params(kp2, input_size, hidden2, output_size,
                                    weight_dtype=jnp.bfloat16)
    out2 = jax.block_until_ready(
        dense_net_forward(x2, params2, force_per_layer=True))
    ref2 = dense_net_reference(x2, params2)
    assert out2.shape == (batch, output_size)
    assert jnp.allclose(out2, ref2, atol=1e-2, rtol=1e-2), "tiled path mismatch"

    print("KERNEL_OK")
</pallas_src>

<mosaic_0001>
module attributes {stable_mosaic.version = 11 : i64} {
  func.func @_fused_mlp_kernel(%arg0: i32, %arg1: memref<8x128xf32, #tpu.memory_space<vmem>>, %arg2: memref<1x128x128xf32, #tpu.memory_space<vmem>>, %arg3: memref<1x1x128xf32, #tpu.memory_space<vmem>>, %arg4: memref<8x128xf32, #tpu.memory_space<vmem>>, %arg5: memref<8x128xf32, #tpu.memory_space<vmem>>) attributes {dimension_semantics = [#tpu.dimension_semantics<arbitrary>], iteration_bounds = array<i64: 7>, scalar_prefetch = 0 : i64, scratch_operands = 1 : i64, tpu.core_type = #tpu.core_type<tc>, window_params = [{pipeline_mode = #tpu.pipeline_mode<synchronous>, transform_indices = @transform_0, window_bounds = array<i64: 8, 128>}, {transform_indices = @transform_1, window_bounds = array<i64: 1, 128, 128>}, {transform_indices = @transform_2, window_bounds = array<i64: 1, 1, 128>}, {pipeline_mode = #tpu.pipeline_mode<synchronous>, transform_indices = @transform_3, window_bounds = array<i64: 8, 128>}]} {
    %c0_i32 = arith.constant 0 : i32
    %0 = arith.cmpi eq, %arg0, %c0_i32 : i32
    %1 = arith.extui %0 : i1 to i32
    %c0_i32_0 = arith.constant 0 : i32
    %2 = arith.cmpi ne, %1, %c0_i32_0 : i32
    scf.if %2 {
      %c0_11 = arith.constant 0 : index
      %c0_12 = arith.constant 0 : index
      %17 = vector.load %arg1[%c0_11, %c0_12] : memref<8x128xf32, #tpu.memory_space<vmem>>, vector<8x128xf32>
      %c0_13 = arith.constant 0 : index
      %c0_14 = arith.constant 0 : index
      %18 = vector.load %arg5[%c0_13, %c0_14] : memref<8x128xf32, #tpu.memory_space<vmem>>, vector<8x128xf32>
      tpu.vector_store %arg5[%c0_13, %c0_14], %17 {strides = array<i32>} : memref<8x128xf32, #tpu.memory_space<vmem>>, vector<8x128xf32>,
    } else {
    }
    %c0 = arith.constant 0 : index
    %c0_1 = arith.constant 0 : index
    %3 = vector.load %arg5[%c0, %c0_1] : memref<8x128xf32, #tpu.memory_space<vmem>>, vector<8x128xf32>
    %c0_2 = arith.constant 0 : index
    %c0_3 = arith.constant 0 : index
    %c0_4 = arith.constant 0 : index
    %4 = vector.load %arg2[%c0_2, %c0_3, %c0_4] : memref<1x128x128xf32, #tpu.memory_space<vmem>>, vector<1x128x128xf32>
    %5 = vector.shape_cast %4 : vector<1x128x128xf32> to vector<128x128xf32>
    %cst = arith.constant dense<0.000000e+00> : vector<8x128xf32>
    %6 = tpu.matmul %3, %5, %cst {dimension_numbers = #tpu.dot_dimension_numbers<[1], [0], [0], [1], [0, 0, 1, 1], [], []>} : vector<8x128xf32>, vector<128x128xf32>, vector<8x128xf32> -> vector<8x128xf32>
    %c0_5 = arith.constant 0 : index
    %c0_6 = arith.constant 0 : index
    %c0_7 = arith.constant 0 : index
    %7 = vector.load %arg3[%c0_5, %c0_6, %c0_7] : memref<1x1x128xf32, #tpu.memory_space<vmem>>, vector<1x1x128xf32>
    %8 = vector.shape_cast %7 : vector<1x1x128xf32> to vector<1x128xf32>
    %9 = vector.broadcast %8 : vector<1x128xf32> to vector<8x128xf32>
    %10 = arith.addf %6, %9 : vector<8x128xf32>
    %c6_i32 = arith.constant 6 : i32
    %11 = arith.cmpi slt, %arg0, %c6_i32 : i32
    %12 = arith.extui %11 : i1 to i32
    %c0_i32_8 = arith.constant 0 : i32
    %13 = arith.cmpi ne, %12, %c0_i32_8 : i32
    scf.if %13 {
      %cst_11 = arith.constant 0.000000e+00 : f32
      %17 = vector.broadcast %cst_11 : f32 to vector<8x128xf32>
      %18 = arith.maximumf %10, %17 : vector<8x128xf32>
      %c0_12 = arith.constant 0 : index
      %c0_13 = arith.constant 0 : index
      %19 = vector.load %arg5[%c0_12, %c0_13] : memref<8x128xf32, #tpu.memory_space<vmem>>, vector<8x128xf32>
      tpu.vector_store %arg5[%c0_12, %c0_13], %18 {strides = array<i32>} : memref<8x128xf32, #tpu.memory_space<vmem>>, vector<8x128xf32>,
    } else {
    }
    %c6_i32_9 = arith.constant 6 : i32
    %14 = arith.cmpi eq, %arg0, %c6_i32_9 : i32
    %15 = arith.extui %14 : i1 to i32
    %c0_i32_10 = arith.constant 0 : i32
    %16 = arith.cmpi ne, %15, %c0_i32_10 : i32
    scf.if %16 {
      %c0_11 = arith.constant 0 : index
      %c0_12 = arith.constant 0 : index
      %17 = vector.load %arg4[%c0_11, %c0_12] : memref<8x128xf32, #tpu.memory_space<vmem>>, vector<8x128xf32>
      tpu.vector_store %arg4[%c0_11, %c0_12], %10 {strides = array<i32>} : memref<8x128xf32, #tpu.memory_space<vmem>>, vector<8x128xf32>,
    } else {
    }
    return
  }
  func.func @transform_0(%arg0: i32) -> (i32, i32) {
    %c0_i32 = arith.constant 0 : i32
    %c0_i32_0 = arith.constant 0 : i32
    %c0_i32_1 = arith.constant 0 : i32
    return %c0_i32, %c0_i32_0 : i32, i32
  }
  func.func @transform_1(%arg0: i32) -> (i32, i32, i32) {
    %c0_i32 = arith.constant 0 : i32
    %c0_i32_0 = arith.constant 0 : i32
    %c0_i32_1 = arith.constant 0 : i32
    return %arg0, %c0_i32, %c0_i32_0 : i32, i32, i32
  }
  func.func @transform_2(%arg0: i32) -> (i32, i32, i32) {
    %c0_i32 = arith.constant 0 : i32
    %c0_i32_0 = arith.constant 0 : i32
    %c0_i32_1 = arith.constant 0 : i32
    return %arg0, %c0_i32, %c0_i32_0 : i32, i32, i32
  }
  func.func @transform_3(%arg0: i32) -> (i32, i32) {
    %c0_i32 = arith.constant 0 : i32
    %c0_i32_0 = arith.constant 0 : i32
    %c0_i32_1 = arith.constant 0 : i32
    return %c0_i32, %c0_i32_0 : i32, i32
  }
}

</mosaic_0001>

<bundles_post_ra>
// kernel: dense_net_forward_fused.1
= control target key start
LH: loop header
LB: loop body
LE: loop exit
PB: predicated region body
PF: predicated region fallthrough
CT: control target
= control target key end

     0   :  { %8 = vsyncpa [#allocation4], 0  ;;  %s798_s0 = inlined_call_operand.vmem [shape: f32[8,128], index: 0, kind: input, shape index: {}]   ;;  %s799_s1 = inlined_call_operand.hbm [shape: f32[7,128,128], index: 1, kind: input, shape index: {}]   ;;  %s800_s2 = inlined_call_operand.vmem [shape: f32[7,1,128], index: 2, kind: input, shape index: {}]   ;;  %s801_s3 = inlined_call_operand.hbm [shape: f32[8,128], index: 3, kind: output, shape index: {}]  }
   0x1   :  { %10 = vsyncpa [#allocation4 + $0x1], 0 }
   0x2   :  { %11 = vsyncpa [#allocation5], 0  ;;  %s635_s12 = smov 0   ;;  %s637_s13 = smov 0  }
   0x3   :  { %s639_s14 = smov 0   ;;  %s641_s15 = smov 0  }
   0x4 LB: > { %s654_s16 = sadd.s32 4294967295, %s606_s15   ;;  %s657_s17 = sadd.s32 1, %s606_s15   ;;  %s606_s15 = sphi %s641_s15, %s808_s15   ;;  %s602_s14 = sphi %s639_s14, %s807_s14   ;;  %s598_s13 = sphi %s637_s13, %s806_s13   ;;  %s594_s12 = sphi %s635_s12, %s805_s12  }
   0x5   : > { %s42_s18 = ssub.s32 %s606_s15, %s657_s17  ;;  %s45_s19 = sadd.s32 1, %s602_s14 }
   0x6   : > { %p43_p0 = scmp.eq.s32.totalorder %s42_s18, 0  ;;  %p52_p1 = scmp.ne.s32.totalorder %s602_s14, %s598_s13 }
   0x7   : > { %p53_p2 = scmp.eq.s32.totalorder %s606_s15, 0  ;;  %p58_p3 = scmp.ne.s32.totalorder %s598_s13, %s594_s12 }
   0x8   : > { %s667_s20 = scalar_select %p43_p0, %s602_s14, %s45_s19  }
   0x9   : > { %p54_p4 = por %p53_p2, %p52_p1  ;;  %p59_p5 = scmp.eq.s32.totalorder %s654_s16, 0 }
   0xa   : > { %p471_p6 = scmp.lt.s32.totalorder %s606_s15, 7  ;;  %s132_s22 = sand.u32 1, %s602_s14  }
   0xb   : > { %p671_p7 = por %p59_p5, %p58_p3  ;;  %s371_s23 = sshll.u32 %s132_s22, 7 }
   0xc   : > { %s384_s24 = sshll.u32 %s606_s15, 11  ;;  %s136_s28 = scalar_lea.vmem [#allocation3], %s371_s23 }
   0xd   : > { %s680_s27 = scalar_lea.hbm %s799_s1, %s384_s24  ;;  %s143_s29 = sshll.u32 %s136_s28, 4  ;;  %s682_s29 = int_to_ptr.vmem [resolvable:$true] %s143_s29 }
   0xe   : > { %p684_p8 = pnand %p471_p6, %p54_p4  ;;  %s689_s4 = scalar_lea.sflag [#allocation4], %s132_s22 }
   0xf   : > { %s512_s5 = scalar_lea.hbm %s680_s27, 2048  ;;  %s517_s8 = scalar_lea.hbm %s799_s1, 14336 }
  0x10   : > { %p513_p10 = scmp.ne.s32.totalorder %s680_s27, %s512_s5  ;;  %p514_p11 = pneg %p684_p8 }
  0x11   : > { %p518_p0 = scmp.lt.u32.totalorder %s680_s27, %s799_s1  ;;  %p519_p1 = scmp.lt.u32.totalorder %s517_s8, %s512_s5 }
  0x12   : > { %p515_p12 = pnand %p514_p11, %p513_p10  ;;  %p521_p3 = scmp.lt.u32.totalorder %s512_s5, %s680_s27 }
  0x13   : > { %p520_p2 = por %p519_p1, %p518_p0 }
  0x14   : > { %p516_p13 = pneg %p515_p12 }
  0x15   : > { %p522_p4 = por %p521_p3, %p520_p2 }
  0x17   : > { %p523_p5 = pnand %p522_p4, %p516_p13 }
  0x19   : > { %526 = shalt.err (!%p523_p5)
}
  0x1a   : > { %s527_s11 = scalar_lea.vmem %s682_s29, 2048  ;;  %s608_s12 = smov [#allocation3]  }
  0x1b   : > { %p528_p6 = scmp.ne.s32.totalorder %s682_s29, %s527_s11  ;;  %s532_s18 = sshll.u32 %s608_s12, 4  ;;  %s533_s18 = int_to_ptr.vmem [resolvable:$false] %s532_s18 }
  0x1c   : > { %s534_s19 = scalar_lea.vmem %s533_s18, 4096  ;;  %p535_p9 = scmp.lt.s32.totalorder %s682_s29, %s533_s18 }
  0x1d   : > { %p530_p10 = pnand %p528_p6, %p514_p11  ;;  %p536_p0 = scmp.lt.s32.totalorder %s534_s19, %s527_s11 }
  0x1f   : > { %p531_p12 = pneg %p530_p10  ;;  %p537_p1 = por %p536_p0, %p535_p9 }
  0x21   : > { %p538_p2 = pnand %p537_p1, %p531_p12 }
  0x23   : > { %541 = shalt.err (!%p538_p2)
}
  0x24   : > { %s609_s22 = smov 128   ;;  %s610_s23 = smov 8  }
  0x25   : > { %470 = dma.hbm_to_vmem [thread:$0]  (!%p684_p8), %s680_s27, 2048, %s682_s29, %s689_s4, %s609_s22, %s609_s22, %s610_s23  }
  0x26   : > { %p157_p11 = scmp.lt.s32.totalorder %s606_s15, 8  ;;  %p804_p13 = scmp.ge.s32.totalorder %s606_s15, 1 }
  0x28   : > { %p158_p3 = pnand %p804_p13, %p157_p11 }
  0x29   : > { %s163_s24 = sand.u32 (!%p158_p3), 1, %s598_s13  }
  0x2a   : > { %161 = sbr.rel (%p158_p3) target bundleno = 345 (0x159), region = 32  ;;  %s375_s25 = sshll.u32 (!%p158_p3), %s163_s24, 7 }
  0x2b   : > { %s164_s26 = scalar_lea.sflag (!%p158_p3), [#allocation4], %s163_s24  ;;  %s721_s28 = scalar_lea.vmem (!%p158_p3), [#allocation3], %s375_s25 }
  0x31   : > { %585 = dma.done.wait (%p671_p7), %s164_s26, 2048  }
  0x32   : > { %587 = vsyncadd (%p671_p7), %s164_s26, 4294965248  ;;  %p188_p9 = scmp.lt.s32.totalorder %s654_s16, 6  ;;  %p376_p8 = scmp.ne.s32.totalorder %s654_s16, 0 }
  0x33   : > { %v195_v0 = vld [vmem:[%s798_s0] sm:$0xff] (!%p376_p8) }
  0x34   : > { %s729_s27 = scalar_select %p188_p9, %s654_s16, 6 }
  0x35   : > { %194 = sbr.rel (%p376_p8) target bundleno = 60 (0x3c), region = 40  ;;  %196 = vst [vmem:[#allocation2] sm:$0xff] (!%p376_p8), %v195_v0 }
  0x36   : > { %s190_s30 = scalar_lea.vmem %s800_s2, %s729_s27 }
  0x3c PF: > { %v198_v1 = vld [vmem:[%s721_s28] sm:$0xff]  ;;  %v199_v2 = vld [vmem:[%s721_s28 + $0x8] sm:$0xff]  ;;  %v200_v3 = vld [vmem:[%s721_s28 + $0x10] sm:$0xff]  ;;  %v611_v4 = vmov 0.0|0.0   ;;  %vm612_vm0 = vmmov 0   ;;  %v613_v7 = vmov 0.0  }
  0x3d   : > { %437 = vmatprep.subr.bf16.mxu0 %v611_v4  ;;  %v438_v5 = vpack.c.bf16 %v199_v2, %v198_v1  ;;  %v201_v6 = vld [vmem:[%s721_s28 + $0x18] sm:$0xff]  ;;  %434 = vmatprep.mubr.msk.f32.mxu0 %vm612_vm0, %v613_v7  ;;  %v202_v9 = vld [vmem:[%s721_s28 + $0x20] sm:$0xff]  ;;  %v203_v10 = vld [vmem:[%s721_s28 + $0x28] sm:$0xff]  ;;  %p378_p7 = scmp.ge.s32.totalorder %s654_s16, 6 }
  0x3e   : > { %v441_v8 = vpack.c.bf16 %v201_v6, %v200_v3  ;;  %v444_v11 = vpack.c.bf16 %v203_v10, %v202_v9  ;;  %v204_v12 = vld [vmem:[%s721_s28 + $0x30] sm:$0xff]  ;;  %v205_v13 = vld [vmem:[%s721_s28 + $0x38] sm:$0xff]  ;;  %v206_v15 = vld [vmem:[%s721_s28 + $0x40] sm:$0xff] }
  0x3f   : > { %439 = vmatpush3.bf16.msra.mxu0 %v438_v5  ;;  %v447_v14 = vpack.c.bf16 %v205_v13, %v204_v12  ;;  %v207_v16 = vld [vmem:[%s721_s28 + $0x48] sm:$0xff]  ;;  %v208_v18 = vld [vmem:[%s721_s28 + $0x50] sm:$0xff]  ;;  %v209_v19 = vld [vmem:[%s721_s28 + $0x58] sm:$0xff] }
  0x40   : > { %440 = vmatprep.subr.bf16.mxu0 %v611_v4  ;;  %v450_v17 = vpack.c.bf16 %v207_v16, %v206_v15  ;;  %v453_v20 = vpack.c.bf16 %v209_v19, %v208_v18  ;;  %v210_v21 = vld [vmem:[%s721_s28 + $0x60] sm:$0xff]  ;;  %v211_v22 = vld [vmem:[%s721_s28 + $0x68] sm:$0xff]  ;;  %v212_v24 = vld [vmem:[%s721_s28 + $0x70] sm:$0xff] }
  0x41   : > { %v456_v23 = vpack.c.bf16 %v211_v22, %v210_v21  ;;  %v213_v25 = vld [vmem:[%s721_s28 + $0x78] sm:$0xff] }
  0x42   : > { %v459_v26 = vpack.c.bf16 %v213_v25, %v212_v24  ;;  %v197_v27 = vld [vmem:[#allocation2] sm:$0xff] }
  0x43   : > { %442 = vmatpush3.bf16.msra.mxu0 %v441_v8  ;;  %v377_v28 = vld [vmem:[%s190_s30] ss:$0 sm:$0xff] }
  0x44   : > { %443 = vmatprep.subr.bf16.mxu0 %v611_v4 }
  0x47   : > { %445 = vmatpush3.bf16.msra.mxu0 %v444_v11 }
  0x48   : > { %446 = vmatprep.subr.bf16.mxu0 %v611_v4 }
  0x4b   : > { %448 = vmatpush3.bf16.msra.mxu0 %v447_v14 }
  0x4c   : > { %449 = vmatprep.subr.bf16.mxu0 %v611_v4 }
  0x4f   : > { %451 = vmatpush3.bf16.msra.mxu0 %v450_v17 }
  0x50   : > { %452 = vmatprep.subr.bf16.mxu0 %v611_v4 }
  0x53   : > { %454 = vmatpush3.bf16.msra.mxu0 %v453_v20 }
  0x54   : > { %455 = vmatprep.subr.bf16.mxu0 %v611_v4 }
  0x57   : > { %457 = vmatpush3.bf16.msra.mxu0 %v456_v23 }
  0x58   : > { %458 = vmatprep.subr.bf16.mxu0 %v611_v4 }
  0x5b   : > { %460 = vmatpush3.bf16.msra.mxu0 %v459_v26 }
  0x5e   : > { %435 = vmatmul.mubr.f32.vlgmr.msra.gmra.mrb[0].mxu0 %v197_v27 }
 0x12c   : > { %294 = sbr.rel (%p378_p7) target bundleno = 311 (0x137), region = 44 }
 0x131   : > { %v287_v29 = vpop.f32.mrb[0].mxu0 }
 0x132   : > { %v288_v30 = vadd.f32 %v377_v28, %v287_v29  ;;  %v436_v31 = vpop.f32.mrb[1].mxu0 }
 0x134   : > { %v295_v32 = vmax.f32 %v288_v30, 0.0 }
 0x136   : > { %296 = vst [vmem:[#allocation2] sm:$0xff] %v295_v32 }
 0x137 PF: > { %p379_p4 = scmp.ne.s32.totalorder %s654_s16, 6 }
 0x138   : > { %301 = vst [vmem:[#allocation6] sm:$0xff] (!%p379_p4), %v288_v30 }
 0x139   : > { %300 = sbr.rel (%p379_p4) target bundleno = 320 (0x140), region = 48 }
 0x140 PF: > { %p472_p5 = scmp.eq.s32.totalorder %s654_s16, 6  ;;  %s614_s7 = smov [#allocation6]  }
 0x141   : > { %s309_s8 = sshll.u32 %s614_s7, 4  ;;  %s310_s8 = int_to_ptr.vmem [resolvable:$true] %s309_s8 }
 0x142   : > { %s542_s9 = scalar_lea.vmem %s310_s8, 128  ;;  %p549_p0 = scmp.lt.s32.totalorder %s310_s8, %s310_s8 }
 0x143   : > { %p543_p6 = scmp.ne.s32.totalorder %s310_s8, %s542_s9  ;;  %p550_p1 = scmp.lt.s32.totalorder %s542_s9, %s542_s9 }
 0x145   : > { %p544_p10 = pnand %p543_p6, %p472_p5  ;;  %p551_p2 = por %p550_p1, %p549_p0 }
 0x147   : > { %p545_p12 = pneg %p544_p10 }
 0x149   : > { %p552_p11 = pnand %p551_p2, %p545_p12 }
 0x14b   : > { %555 = shalt.err (!%p552_p11)
}
 0x14c   : > { %s556_s12 = scalar_lea.hbm %s801_s3, 128 }
 0x14d   : > { %p557_p13 = scmp.ne.s32.totalorder %s801_s3, %s556_s12  ;;  %p562_p8 = scmp.lt.u32.totalorder %s556_s12, %s801_s3 }
 0x14f   : > { %p558_p3 = pnand %p557_p13, %p472_p5 }
 0x151   : > { %p559_p9 = pneg %p558_p3 }
 0x153   : > { %p564_p7 = pnand %p562_p8, %p559_p9 }
 0x155   : > { %567 = shalt.err (!%p564_p7)
}
 0x156   : > { %464 = dma.vmem_to_hbm [thread:$0]  (%p472_p5), %s310_s8, 128, %s801_s3, [#allocation5]  }
 0x157   : > { %589 = dma.done.wait (%p472_p5), [#allocation5], 128  }
 0x158   : > { %591 = vsyncadd (%p472_p5), [#allocation5], 4294967168 }
 0x159 PF: > { %p14_p4 = scmp.ge.s32.totalorder %s657_s17, 9   ;;  %s805_s12 = smov %s598_s13 }
 0x15a   : > { %s806_s13 = smov %s602_s14  ;;  %s807_s14 = smov %s667_s20 }
 0x15b   : > { %s808_s15 = smov %s657_s17  ;;  %16 = sbr.rel (!%p14_p4) target bundleno = 4 (0x4), region = 84 }
 0x162   :  { %322 = vsyncpa [#allocation4], 1 }
 0x163   :  { %324 = vsyncpa [#allocation4 + $0x1], 1 }
 0x164   :  { %325 = vsyncpa [#allocation5], 1 }
 0x165   :  { %327 = vsyncpa [#allocation5 + $0x1], 1 }

</bundles_post_ra>
